<compile_context>
chip_gen: v7x
topology: tpu7x:2x2x1
jax: 0.10.0
libtpu: 0.0.40
codegen_flags: <defaults>
</compile_context>

<pallas_src>
import math
import jax
import jax.numpy as jnp
from jax.experimental import pallas as pl
from jax.experimental.pallas import tpu as pltpu


def _make_divisible(v, divisor, min_value=None):
    if min_value is None:
        min_value = divisor
    new_v = max(min_value, int(v + divisor / 2) // divisor * divisor)
    if new_v < 0.9 * v:
        new_v += divisor
    return new_v


def _se_kernel(x_ref, w1t_ref, b1_ref, w2t_ref, b2_ref, o_ref):
    # x_ref block: (Nb, C, HW) — spatial on the lane (last) axis.
    # Global average pool over spatial: lane-axis reduce, f32 accumulation.
    pooled = jnp.mean(x_ref[...].astype(jnp.float32), axis=-1)      # (Nb, C)

    # conv_reduce: 1x1 conv == matmul; weight pre-transposed to (C, C_red).
    s = jnp.dot(pooled, w1t_ref[...].astype(jnp.float32),
                preferred_element_type=jnp.float32) + b1_ref[...]   # (Nb, C_red)
    s = jnp.maximum(s, 0.0)                                         # ReLU

    # conv_expand: weight pre-transposed to (C_red, C).
    g = jnp.dot(s, w2t_ref[...].astype(jnp.float32),
                preferred_element_type=jnp.float32) + b2_ref[...]   # (Nb, C)

    # hard_sigmoid gate: relu6(g + 3) / 6
    g = jnp.clip(g + 3.0, 0.0, 6.0) * (1.0 / 6.0)

    # Scale input by gate, broadcast along spatial (lane) axis.  Multiply in
    # the input's native dtype so the big tile never materializes in f32.
    o_ref[...] = x_ref[...] * g[:, :, None].astype(o_ref.dtype)


def _pick_block_batch(N, C, HW, itemsize, target_bytes=4 << 20):
    """Largest divisor of N whose (Nb, C, HW) block fits in target_bytes,
    preferring >=2 grid steps so both v7x TensorCores get work."""
    fitting = [nb for nb in range(1, N + 1)
               if N % nb == 0 and nb * C * HW * itemsize <= target_bytes]
    if not fitting:
        return 1
    multi_step = [nb for nb in fitting if N // nb >= 2]
    return max(multi_step) if multi_step else max(fitting)


def squeeze_excite_pallas(x_nchw, w1, b1, w2, b2):
    """x_nchw: (N, C, H, W). Weights: w1 (C_red, C), b1 (C_red,), w2 (C, C_red), b2 (C,)."""
    N, C, H, W = x_nchw.shape
    C_red = w1.shape[0]
    HW = H * W

    # NCHW -> (N, C, HW): contiguous reshape, no HBM transpose traffic.
    x = x_nchw.reshape(N, C, HW)

    # Pre-transpose the tiny weights once in the wrapper (free vs per-iter .T
    # inside the kernel, keeps the XLU slot for the pooling reduce).
    w1t = jnp.transpose(w1)              # (C, C_red)
    w2t = jnp.transpose(w2)              # (C_red, C)
    b1_2d = b1.reshape(1, C_red).astype(jnp.float32)
    b2_2d = b2.reshape(1, C).astype(jnp.float32)

    nb = _pick_block_batch(N, C, HW, x.dtype.itemsize)
    grid = (N // nb,)

    out = pl.pallas_call(
        _se_kernel,
        out_shape=jax.ShapeDtypeStruct((N, C, HW), x.dtype),
        grid_spec=pltpu.PrefetchScalarGridSpec(
            num_scalar_prefetch=0,
            grid=grid,
            in_specs=[
                pl.BlockSpec((nb, C, HW), lambda n: (n, 0, 0)),
                pl.BlockSpec((C, C_red), lambda n: (0, 0)),
                pl.BlockSpec((1, C_red), lambda n: (0, 0)),
                pl.BlockSpec((C_red, C), lambda n: (0, 0)),
                pl.BlockSpec((1, C), lambda n: (0, 0)),
            ],
            out_specs=pl.BlockSpec((nb, C, HW), lambda n: (n, 0, 0)),
        ),
        compiler_params=pltpu.CompilerParams(
            dimension_semantics=("parallel",),
            # Blocks are capped at ~4 MiB; double-buffered in+out stays well
            # under this limit on v5e/v6e/v7x (v7x physical VMEM = 64 MiB).
            vmem_limit_bytes=48 * 1024 * 1024,
        ),
    )(x, w1t, b1_2d, w2t, b2_2d)

    # (N, C, HW) -> NCHW: free reshape.
    return out.reshape(N, C, H, W)


def squeeze_excite_ref(x_nchw, w1, b1, w2, b2):
    """Pure-JAX reference mirroring the PyTorch module."""
    pooled = jnp.mean(x_nchw, axis=(2, 3))                       # (N, C)
    s = jnp.maximum(pooled @ w1.T + b1, 0.0)                     # (N, C_red)
    g = s @ w2.T + b2                                            # (N, C)
    g = jnp.clip(g + 3.0, 0.0, 6.0) / 6.0
    return x_nchw * g[:, :, None, None]


if __name__ == "__main__":
    # Small shapes consistent with the module.
    N, C, H, W = 2, 64, 16, 16
    se_ratio, divisor = 0.25, 4
    C_red = _make_divisible(C * se_ratio, divisor)               # 16

    key = jax.random.PRNGKey(0)
    kx, k1, kb1, k2, kb2 = jax.random.split(key, 5)

    x = jax.random.normal(kx, (N, C, H, W), dtype=jnp.float32)

    # Deterministic parameter init (Conv2d 1x1 weights flattened to 2D).
    fan_in1 = C
    w1 = jax.random.uniform(k1, (C_red, C), jnp.float32,
                            -1.0 / math.sqrt(fan_in1), 1.0 / math.sqrt(fan_in1))
    b1 = jax.random.uniform(kb1, (C_red,), jnp.float32,
                            -1.0 / math.sqrt(fan_in1), 1.0 / math.sqrt(fan_in1))
    fan_in2 = C_red
    w2 = jax.random.uniform(k2, (C, C_red), jnp.float32,
                            -1.0 / math.sqrt(fan_in2), 1.0 / math.sqrt(fan_in2))
    b2 = jax.random.uniform(kb2, (C,), jnp.float32,
                            -1.0 / math.sqrt(fan_in2), 1.0 / math.sqrt(fan_in2))

    out = squeeze_excite_pallas(x, w1, b1, w2, b2)
    out = jax.block_until_ready(out)

    ref = squeeze_excite_ref(x, w1, b1, w2, b2)
    assert out.shape == (N, C, H, W)
    assert jnp.allclose(out, ref, atol=1e-5, rtol=1e-5), "mismatch vs reference"

    print("KERNEL_OK")
</pallas_src>

<mosaic_0001>
module attributes {stable_mosaic.version = 11 : i64} {
  func.func @_se_kernel(%arg0: i32, %arg1: memref<1x64x256xf32, #tpu.memory_space<vmem>>, %arg2: memref<64x16xf32, #tpu.memory_space<vmem>>, %arg3: memref<1x16xf32, #tpu.memory_space<vmem>>, %arg4: memref<16x64xf32, #tpu.memory_space<vmem>>, %arg5: memref<1x64xf32, #tpu.memory_space<vmem>>, %arg6: memref<1x64x256xf32, #tpu.memory_space<vmem>>) attributes {dimension_semantics = [#tpu.dimension_semantics<parallel>], iteration_bounds = array<i64: 2>, scalar_prefetch = 0 : i64, scratch_operands = 0 : i64, tpu.core_type = #tpu.core_type<tc>, window_params = [{transform_indices = @transform_0, window_bounds = array<i64: 1, 64, 256>}, {pipeline_mode = #tpu.pipeline_mode<synchronous>, transform_indices = @transform_1, window_bounds = array<i64: 64, 16>}, {pipeline_mode = #tpu.pipeline_mode<synchronous>, transform_indices = @transform_2, window_bounds = array<i64: 1, 16>}, {pipeline_mode = #tpu.pipeline_mode<synchronous>, transform_indices = @transform_3, window_bounds = array<i64: 16, 64>}, {pipeline_mode = #tpu.pipeline_mode<synchronous>, transform_indices = @transform_4, window_bounds = array<i64: 1, 64>}, {transform_indices = @transform_5, window_bounds = array<i64: 1, 64, 256>}]} {
    %c0 = arith.constant 0 : index
    %c0_0 = arith.constant 0 : index
    %c0_1 = arith.constant 0 : index
    %0 = vector.load %arg1[%c0, %c0_0, %c0_1] : memref<1x64x256xf32, #tpu.memory_space<vmem>>, vector<1x64x256xf32>
    %cst = arith.constant dense<0.000000e+00> : vector<1x64xf32>
    %1 = vector.multi_reduction <add>, %0, %cst [2] : vector<1x64x256xf32> to vector<1x64xf32>
    %cst_2 = arith.constant 2.560000e+02 : f32
    %2 = vector.broadcast %cst_2 : f32 to vector<1x64xf32>
    %3 = arith.divf %1, %2 : vector<1x64xf32>
    %c0_3 = arith.constant 0 : index
    %c0_4 = arith.constant 0 : index
    %4 = vector.load %arg2[%c0_3, %c0_4] : memref<64x16xf32, #tpu.memory_space<vmem>>, vector<64x16xf32>
    %cst_5 = arith.constant dense<0.000000e+00> : vector<1x16xf32>
    %5 = tpu.matmul %3, %4, %cst_5 {dimension_numbers = #tpu.dot_dimension_numbers<[1], [0], [0], [1], [0, 0, 1, 1], [], []>} : vector<1x64xf32>, vector<64x16xf32>, vector<1x16xf32> -> vector<1x16xf32>
    %c0_6 = arith.constant 0 : index
    %c0_7 = arith.constant 0 : index
    %6 = vector.load %arg3[%c0_6, %c0_7] : memref<1x16xf32, #tpu.memory_space<vmem>>, vector<1x16xf32>
    %7 = arith.addf %5, %6 : vector<1x16xf32>
    %cst_8 = arith.constant 0.000000e+00 : f32
    %8 = vector.broadcast %cst_8 : f32 to vector<1x16xf32>
    %9 = arith.maximumf %7, %8 : vector<1x16xf32>
    %c0_9 = arith.constant 0 : index
    %c0_10 = arith.constant 0 : index
    %10 = vector.load %arg4[%c0_9, %c0_10] : memref<16x64xf32, #tpu.memory_space<vmem>>, vector<16x64xf32>
    %cst_11 = arith.constant dense<0.000000e+00> : vector<1x64xf32>
    %11 = tpu.matmul %9, %10, %cst_11 {dimension_numbers = #tpu.dot_dimension_numbers<[1], [0], [0], [1], [0, 0, 1, 1], [], []>} : vector<1x16xf32>, vector<16x64xf32>, vector<1x64xf32> -> vector<1x64xf32>
    %c0_12 = arith.constant 0 : index
    %c0_13 = arith.constant 0 : index
    %12 = vector.load %arg5[%c0_12, %c0_13] : memref<1x64xf32, #tpu.memory_space<vmem>>, vector<1x64xf32>
    %13 = arith.addf %11, %12 : vector<1x64xf32>
    %cst_14 = arith.constant 3.000000e+00 : f32
    %14 = vector.broadcast %cst_14 : f32 to vector<1x64xf32>
    %15 = arith.addf %13, %14 : vector<1x64xf32>
    %cst_15 = arith.constant 0.000000e+00 : f32
    %cst_16 = arith.constant 6.000000e+00 : f32
    %16 = vector.broadcast %cst_15 : f32 to vector<1x64xf32>
    %17 = arith.maximumf %16, %15 : vector<1x64xf32>
    %18 = vector.broadcast %cst_16 : f32 to vector<1x64xf32>
    %19 = arith.minimumf %18, %17 : vector<1x64xf32>
    %cst_17 = arith.constant 0.166666672 : f32
    %20 = vector.broadcast %cst_17 : f32 to vector<1x64xf32>
    %21 = arith.mulf %19, %20 : vector<1x64xf32>
    %c0_18 = arith.constant 0 : index
    %c0_19 = arith.constant 0 : index
    %c0_20 = arith.constant 0 : index
    %22 = vector.load %arg1[%c0_18, %c0_19, %c0_20] : memref<1x64x256xf32, #tpu.memory_space<vmem>>, vector<1x64x256xf32>
    %23 = vector.shape_cast %21 : vector<1x64xf32> to vector<1x64x1xf32>
    %24 = vector.broadcast %23 : vector<1x64x1xf32> to vector<1x64x256xf32>
    %25 = arith.mulf %22, %24 : vector<1x64x256xf32>
    %c0_21 = arith.constant 0 : index
    %c0_22 = arith.constant 0 : index
    %c0_23 = arith.constant 0 : index
    %26 = vector.load %arg6[%c0_21, %c0_22, %c0_23] : memref<1x64x256xf32, #tpu.memory_space<vmem>>, vector<1x64x256xf32>
    tpu.vector_store %arg6[%c0_21, %c0_22, %c0_23], %25 {strides = array<i32>} : memref<1x64x256xf32, #tpu.memory_space<vmem>>, vector<1x64x256xf32>,
    return
  }
  func.func @transform_0(%arg0: i32) -> (i32, i32, i32) {
    %c0_i32 = arith.constant 0 : i32
    %c0_i32_0 = arith.constant 0 : i32
    %c0_i32_1 = arith.constant 0 : i32
    return %arg0, %c0_i32, %c0_i32_0 : i32, i32, i32
  }
  func.func @transform_1(%arg0: i32) -> (i32, i32) {
    %c0_i32 = arith.constant 0 : i32
    %c0_i32_0 = arith.constant 0 : i32
    %c0_i32_1 = arith.constant 0 : i32
    return %c0_i32, %c0_i32_0 : i32, i32
  }
  func.func @transform_2(%arg0: i32) -> (i32, i32) {
    %c0_i32 = arith.constant 0 : i32
    %c0_i32_0 = arith.constant 0 : i32
    %c0_i32_1 = arith.constant 0 : i32
    return %c0_i32, %c0_i32_0 : i32, i32
  }
  func.func @transform_3(%arg0: i32) -> (i32, i32) {
    %c0_i32 = arith.constant 0 : i32
    %c0_i32_0 = arith.constant 0 : i32
    %c0_i32_1 = arith.constant 0 : i32
    return %c0_i32, %c0_i32_0 : i32, i32
  }
  func.func @transform_4(%arg0: i32) -> (i32, i32) {
    %c0_i32 = arith.constant 0 : i32
    %c0_i32_0 = arith.constant 0 : i32
    %c0_i32_1 = arith.constant 0 : i32
    return %c0_i32, %c0_i32_0 : i32, i32
  }
  func.func @transform_5(%arg0: i32) -> (i32, i32, i32) {
    %c0_i32 = arith.constant 0 : i32
    %c0_i32_0 = arith.constant 0 : i32
    %c0_i32_1 = arith.constant 0 : i32
    return %arg0, %c0_i32, %c0_i32_0 : i32, i32, i32
  }
}

</mosaic_0001>

<bundles_post_ra>
// kernel: tpu_custom_call.1
= control target key start
LH: loop header
LB: loop body
LE: loop exit
PB: predicated region body
PF: predicated region fallthrough
CT: control target
= control target key end

     0   :  { %10 = vsyncpa [#allocation3], 0  ;;  %s1231_s0 = inlined_call_operand.hbm [shape: f32[2,64,256], index: 0, kind: input, shape index: {}]   ;;  %s1232_s1 = inlined_call_operand.vmem [shape: f32[64,16], index: 1, kind: input, shape index: {}]   ;;  %s1233_s2 = inlined_call_operand.vmem [shape: f32[1,16], index: 2, kind: input, shape index: {}]   ;;  %s1234_s3 = inlined_call_operand.vmem [shape: f32[16,64], index: 3, kind: input, shape index: {}]   ;;  %s1235_s4 = inlined_call_operand.vmem [shape: f32[1,64], index: 4, kind: input, shape index: {}]   ;;  %s1236_s5 = inlined_call_operand.hbm [shape: f32[2,64,256], index: 5, kind: output, shape index: {}]  }
   0x1   :  { %12 = vsyncpa [#allocation3 + $0x1], 0 }
   0x2   :  { %13 = vsyncpa [#allocation4], 0 }
   0x3   :  { %15 = vsyncpa [#allocation4 + $0x1], 0  ;;  %s934_s18 = smov 0   ;;  %s936_s19 = smov 0  }
   0x4   :  { %s938_s20 = smov 0   ;;  %s940_s21 = smov 0  }
   0x5 LB: > { %s955_s22 = sadd.s32 4294967295, %s893_s21   ;;  %s673_s23 = sadd.s32 4294967294, %s893_s21   ;;  %s893_s21 = sphi %s940_s21, %s1249_s21   ;;  %s889_s20 = sphi %s938_s20, %s1248_s20   ;;  %s885_s19 = sphi %s936_s19, %s1247_s19   ;;  %s881_s18 = sphi %s934_s18, %s1246_s18  }
   0x6   : > { %s959_s24 = sadd.s32 1, %s893_s21   ;;  %s28_s25 = sadd.s32 1, %s889_s20 }
   0x7   : > { %s25_s26 = ssub.s32 %s893_s21, %s959_s24  ;;  %p35_p0 = scmp.ne.s32.totalorder %s889_s20, %s885_s19 }
   0x8   : > { %p26_p1 = scmp.eq.s32.totalorder %s25_s26, 0  ;;  %p36_p2 = scmp.eq.s32.totalorder %s893_s21, 0 }
   0x9   : > { %p41_p3 = scmp.ne.s32.totalorder %s885_s19, %s881_s18  ;;  %p42_p4 = scmp.eq.s32.totalorder %s955_s22, 0 }
   0xa   : > { %s971_s27 = scalar_select %p26_p1, %s889_s20, %s28_s25  }
   0xb   : > { %p973_p5 = por %p36_p2, %p35_p0  ;;  %p977_p6 = por %p42_p4, %p41_p3 }
   0xc   : > { %p149_p7 = scmp.eq.s32.totalorder %s955_s22, 1  ;;  %p155_p8 = scmp.eq.s32.totalorder %s673_s23, 1 }
   0xd   : > { %p756_p10 = scmp.lt.s32.totalorder %s893_s21, 2  ;;  %s187_s7 = sand.u32 1, %s889_s20  }
   0xe   : > { %p984_p11 = por %p149_p7, %p35_p0  ;;  %p988_p12 = por %p155_p8, %p41_p3 }
   0xf   : > { %s689_s8 = sshll.u32 %s893_s21, 11  ;;  %s676_s9 = sshll.u32 %s187_s7, 7 }
  0x10   : > { %s1240_s30 = scalar_select %p984_p11, 1, 0 }
  0x11   : > { %s1241_s6 = scalar_select %p988_p12, 1, 0 }
  0x12   : > { %s997_s12 = scalar_lea.hbm %s1231_s0, %s689_s8  ;;  %s191_s13 = scalar_lea.vmem [#allocation2], %s676_s9 }
  0x13   : > { %s198_s14 = sshll.u32 %s191_s13, 4  ;;  %p1001_p13 = pnand %p756_p10, %p973_p5  ;;  %s1005_s14 = int_to_ptr.vmem [resolvable:$true] %s198_s14 }
  0x14   : > { %s1007_s16 = scalar_lea.sflag [#allocation3], %s187_s7  ;;  %s797_s17 = scalar_lea.hbm %s997_s12, 2048 }
  0x15   : > { %p798_p0 = scmp.ne.s32.totalorder %s997_s12, %s797_s17  ;;  %p799_p1 = pneg %p1001_p13 }
  0x16   : > { %s802_s26 = scalar_lea.hbm %s1231_s0, 4096  ;;  %p803_p4 = scmp.lt.u32.totalorder %s997_s12, %s1231_s0 }
  0x17   : > { %p800_p2 = pnand %p799_p1, %p798_p0  ;;  %p804_p5 = scmp.lt.u32.totalorder %s802_s26, %s797_s17 }
  0x18   : > { %p806_p8 = scmp.lt.u32.totalorder %s797_s17, %s997_s12 }
  0x19   : > { %p801_p3 = pneg %p800_p2  ;;  %p805_p7 = por %p804_p5, %p803_p4 }
  0x1b   : > { %p807_p10 = por %p806_p8, %p805_p7 }
  0x1d   : > { %p808_p9 = pnand %p807_p10, %p801_p3 }
  0x1f   : > { %811 = shalt.err (!%p808_p9)
}
  0x20   : > { %s812_s7 = scalar_lea.vmem %s1005_s14, 2048  ;;  %s895_s9 = smov [#allocation2]  }
  0x21   : > { %p813_p0 = scmp.ne.s32.totalorder %s1005_s14, %s812_s7  ;;  %s817_s10 = sshll.u32 %s895_s9, 4  ;;  %s818_s10 = int_to_ptr.vmem [resolvable:$false] %s817_s10 }
  0x22   : > { %s819_s11 = scalar_lea.vmem %s818_s10, 4096  ;;  %p820_p11 = scmp.lt.s32.totalorder %s1005_s14, %s818_s10 }
  0x23   : > { %p815_p2 = pnand %p813_p0, %p799_p1  ;;  %p821_p4 = scmp.lt.s32.totalorder %s819_s11, %s812_s7 }
  0x25   : > { %p816_p12 = pneg %p815_p2  ;;  %p822_p5 = por %p821_p4, %p820_p11 }
  0x27   : > { %p823_p7 = pnand %p822_p5, %p816_p12 }
  0x29   : > { %826 = shalt.err (!%p823_p7)
}
  0x2a   : > { %s896_s13 = smov 256   ;;  %s897_s17 = smov 16  }
  0x2b   : > { %751 = dma.hbm_to_vmem [thread:$0]  (!%p1001_p13), %s997_s12, 2048, %s1005_s14, %s1007_s16, %s896_s13, %s896_s13, %s897_s17  }
  0x2c   : > { %p679_p9 = scmp.ge.s32.totalorder %s893_s21, 1  ;;  %p206_p1 = scmp.lt.s32.totalorder %s893_s21, 3 }
  0x2e   : > { %p207_p3 = pnand %p679_p9, %p206_p1 }
  0x2f   : > { %s1038_s23 = sand.u32 (!%p207_p3), 1, %s885_s19  }
  0x30   : > { %210 = sbr.rel (%p207_p3) target bundleno = 807 (0x327), region = 40  ;;  %s680_s25 = sshll.u32 (!%p207_p3), %s1038_s23, 7 }
  0x31   : > { %s213_s26 = scalar_lea.sflag (!%p207_p3), [#allocation3], %s1038_s23  ;;  %s216_s28 = scalar_lea.vmem (!%p207_p3), [#allocation2], %s680_s25 }
  0x37   : > { %872 = dma.done.wait (%p977_p6), %s213_s26, 2048  }
  0x38   : > { %874 = vsyncadd (%p977_p6), %s213_s26, 4294965248  ;;  %v1048_v0 = vld [vmem:[%s216_s28] sm:$0xff]  ;;  %v1050_v1 = vld [vmem:[%s216_s28 + $0x8] sm:$0xff]  ;;  %v898_v27 = vmov 0.0|0.0   ;;  %vm899_vm0 = vmmov 0   ;;  %v900_v37 = vmov 0.0   ;;  %v309_v38 = vlaneseq }
  0x39   : > { %v1052_v2 = vld [vmem:[%s216_s28 + $0x20] sm:$0xff]  ;;  %v259_v3 = vadd.f32 %v1050_v1, %v1048_v0  ;;  %v1056_v4 = vld [vmem:[%s216_s28 + $0x28] sm:$0xff]  ;;  %v1058_v5 = vld [vmem:[%s216_s28 + $0x10] sm:$0xff]  ;;  %729 = vmatprep.subr.bf16.mxu0 %v898_v27  ;;  %741 = vmatprep.subr.bf16.mxu1 %v898_v27  ;;  %vm320_vm1 = vcmask 130112   ;;  %vm327_vm2 = vcmask 195712   ;;  %vm334_vm3 = vcmask 261312  }
  0x3a   : > { %v1060_v6 = vld [vmem:[%s216_s28 + $0x18] sm:$0xff]  ;;  %v265_v7 = vadd.f32 %v1056_v4, %v1052_v2  ;;  %v1064_v8 = vld [vmem:[%s216_s28 + $0x30] sm:$0xff]  ;;  %v1072_v12 = vld [vmem:[%s216_s28 + $0x40] sm:$0xff]  ;;  %719 = vmatprep.mubr.msk.f32.mxu0 %vm899_vm0, %v900_v37  ;;  %726 = vmatprep.mubr.msk.f32.mxu1 %vm899_vm0, %v900_v37  ;;  %v310_v39 = vand.u32 127, %v309_v38  ;;  %v1120_v40 = vshrl.u32 %v309_v38, 7  ;;  %vm341_vm4 = vcmask 326912  }
  0x3b   : > { %v1066_v9 = vld [vmem:[%s216_s28 + $0x38] sm:$0xff]  ;;  %260 = vadd.xlane.f32.xlu0 %v259_v3  ;;  %v262_v10 = vadd.f32 %v1060_v6, %v1058_v5  ;;  %v1074_v13 = vld [vmem:[%s216_s28 + $0x48] sm:$0xff]  ;;  %v1076_v14 = vld [vmem:[%s216_s28 + $0x50] sm:$0xff]  ;;  %vm348_vm5 = vcmask 392512   ;;  %vm355_vm6 = vcmask 458112   ;;  %vm362_vm7 = vcmask 523712  }
  0x3c   : > { %266 = vadd.xlane.f32.xlu1 %v265_v7  ;;  %v268_v11 = vadd.f32 %v1066_v9, %v1064_v8  ;;  %v1078_v15 = vld [vmem:[%s216_s28 + $0x58] sm:$0xff]  ;;  %v271_v16 = vadd.f32 %v1074_v13, %v1072_v12  ;;  %v1084_v18 = vld [vmem:[%s216_s28 + $0x60] sm:$0xff]  ;;  %v1086_v19 = vld [vmem:[%s216_s28 + $0x68] sm:$0xff]  ;;  %v315_v41 = vadd.s32 4294967288, %v310_v39  ;;  %v322_v43 = vadd.s32 4294967280, %v310_v39  ;;  %s1150_s13 = scalar_lea.vmem [#allocation5], %s680_s25 }
  0x3d   : > { %v274_v17 = vadd.f32 %v1078_v15, %v1076_v14  ;;  %v1088_v20 = vld [vmem:[%s216_s28 + $0x70] sm:$0xff]  ;;  %v1090_v21 = vld [vmem:[%s216_s28 + $0x78] sm:$0xff]  ;;  %v277_v22 = vadd.f32 %v1086_v19, %v1084_v18  ;;  %v292_v24 = vld [vmem:[%s1232_s1] sm:$0xff]  ;;  %v329_v44 = vadd.s32 4294967272, %v310_v39  ;;  %v313_v46 = vsub.s32 %v310_v39, %v1120_v40  ;;  %s690_s25 = sshll.u32 %s955_s22, 11  ;;  %s600_s17 = sshll.u32 %s1150_s13, 4  ;;  %s1183_s17 = int_to_ptr.vmem [resolvable:$true] %s600_s17 }
  0x3e   : > { %v280_v23 = vadd.f32 %v1090_v21, %v1088_v20  ;;  %v293_v25 = vld [vmem:[%s1232_s1 + $0x8] sm:$0xff]  ;;  %v294_v28 = vld [vmem:[%s1232_s1 + $0x10] sm:$0xff]  ;;  %v295_v29 = vld [vmem:[%s1232_s1 + $0x18] sm:$0xff]  ;;  %v318_v48 = vsub.s32 %v315_v41, %v1120_v40  ;;  %v336_v49 = vadd.s32 4294967264, %v310_v39  ;;  %v325_v50 = vsub.s32 %v322_v43, %v1120_v40  ;;  %s1181_s29 = scalar_lea.hbm %s1236_s5, %s690_s25  ;;  %s587_s22 = scalar_lea.sflag [#allocation4], %s1038_s23 }
  0x3f   : > { %263 = vadd.xlane.f32.xlu0 %v262_v10  ;;  %v730_v26 = vpack.c.bf16 %v293_v25, %v292_v24  ;;  %v733_v30 = vpack.c.bf16 %v295_v29, %v294_v28  ;;  %v296_v31 = vld [vmem:[%s1232_s1 + $0x20] sm:$0xff]  ;;  %v297_v32 = vld [vmem:[%s1232_s1 + $0x28] sm:$0xff]  ;;  %v298_v34 = vld [vmem:[%s1232_s1 + $0x30] sm:$0xff]  ;;  %v332_v53 = vsub.s32 %v329_v44, %v1120_v40  ;;  %v343_v54 = vadd.s32 4294967256, %v310_v39  ;;  %s827_s12 = scalar_lea.vmem %s1183_s17, 2048  ;;  %p1243_p11 = scmp.ne.s32.totalorder %s1240_s30, 0 }
  0x40   : > { %269 = vadd.xlane.f32.xlu1 %v268_v11  ;;  %v736_v33 = vpack.c.bf16 %v297_v32, %v296_v31  ;;  %v299_v35 = vld [vmem:[%s1232_s1 + $0x38] sm:$0xff]  ;;  %v339_v60 = vsub.s32 %v336_v49, %v1120_v40  ;;  %v350_v61 = vadd.s32 4294967248, %v310_v39  ;;  %v357_v10 = vadd.s32 4294967240, %v310_v39  ;;  %v438_v39 = vld [vmem:[%s1234_s3] sm:$0xff]  ;;  %v439_v41 = vld [vmem:[%s1234_s3 + $0x8] sm:$0xff]  ;;  %p828_p6 = scmp.ne.s32.totalorder %s1183_s17, %s827_s12  ;;  %s901_s14 = smov [#allocation5]  }
  0x41   : > { %731 = vmatpush3.bf16.msra.mxu0 %v730_v26  ;;  %v739_v36 = vpack.c.bf16 %v299_v35, %v298_v34  ;;  %v346_v7 = vsub.s32 %v343_v54, %v1120_v40  ;;  %vm364_vm8 = vcmask 523264   ;;  %v300_v43 = vld [vmem:[%s1233_s2] sm:$0x1]  ;;  %vm441_vm9 = vcmask 130048   ;;  %s831_s15 = sshll.u32 %s901_s14, 4  ;;  %s832_s15 = int_to_ptr.vmem [resolvable:$false] %s831_s15 }
  0x42   : > { %732 = vmatprep.subr.bf16.mxu0 %v898_v27  ;;  %v353_v26 = vsub.s32 %v350_v61, %v1120_v40  ;;  %v360_v29 = vsub.s32 %v357_v10, %v1120_v40  ;;  %p829_p12 = pnand %p828_p6, %p1243_p11  ;;  %s833_s16 = scalar_lea.vmem %s832_s15, 4096 }
  0x43   : > { %272 = vadd.xlane.f32.xlu0 %v271_v16  ;;  %p834_p8 = scmp.lt.s32.totalorder %s1183_s17, %s832_s15  ;;  %p835_p10 = scmp.lt.s32.totalorder %s833_s16, %s827_s12 }
  0x44   : > { %275 = vadd.xlane.f32.xlu1 %v274_v17  ;;  %p830_p13 = pneg %p829_p12 }
  0x45   : > { %734 = vmatpush3.bf16.msra.mxu0 %v733_v30  ;;  %p836_p0 = por %p835_p10, %p834_p8 }
  0x46   : > { %735 = vmatprep.subr.bf16.mxu0 %v898_v27 }
  0x47   : > { %278 = vadd.xlane.f32.xlu0 %v277_v22  ;;  %p837_p2 = pnand %p836_p0, %p830_p13 }
  0x48   : > { %281 = vadd.xlane.f32.xlu1 %v280_v23 }
  0x49   : > { %737 = vmatpush3.bf16.msra.mxu0 %v736_v33 }
  0x4a   : > { %738 = vmatprep.subr.bf16.mxu0 %v898_v27 }
  0x4d   : > { %740 = vmatpush3.bf16.msra.mxu0 %v739_v36 }
  0xc8   : > { %v261_v42 = vpop.xlane.xlu0 %260 }
  0xc9   : > { %v267_v45 = vpop.xlane.xlu1 %266  ;;  %v284_v47 = vmul.f32 0.00390625, %v261_v42  ;;  %v742_v42 = vpack.c.bf16 %v439_v41, %v438_v39 }
  0xca   : > { %v286_v51 = vmul.f32 0.00390625, %v267_v45 }
  0xcb   : > { %v314_v58 = vrot.slane %v284_v47, %v313_v46  ;;  %743 = vmatpush3.bf16.msra.mxu1 %v742_v42 }
  0xcc   : > { %v264_v52 = vpop.xlane.xlu0 %263  ;;  %v326_v62 = vrot.slane %v286_v51, %v325_v50 }
  0xcd   : > { %v285_v55 = vmul.f32 0.00390625, %v264_v52  ;;  %v270_v56 = vpop.xlane.xlu1 %269 }
  0xce   : > { %v287_v57 = vmul.f32 0.00390625, %v270_v56 }
  0xcf   : > { %v319_v59 = vrot.slane %v285_v55, %v318_v48  ;;  %v440_v48 = vld [vmem:[%s1235_s4] sm:$0x1]  ;;  %v521_v55 = vsub.s32 0, %v1120_v40 }
  0xd0   : > { %v333_v63 = vrot.slane %v287_v57, %v332_v53  ;;  %v273_v3 = vpop.xlane.xlu0 %272 }
  0xd1   : > { %v321_v11 = vsel %vm320_vm1, %v319_v59, %v314_v58  ;;  %v288_v16 = vmul.f32 0.00390625, %v273_v3  ;;  %v276_v17 = vpop.xlane.xlu1 %275 }
  0xd2   : > { %v328_v22 = vsel %vm327_vm2, %v326_v62, %v321_v11  ;;  %v289_v23 = vmul.f32 0.00390625, %v276_v17 }
  0xd3   : > { %v335_v24 = vsel %vm334_vm3, %v333_v63, %v328_v22  ;;  %v340_v25 = vrot.slane %v288_v16, %v339_v60 }
  0xd4   : > { %v347_v27 = vrot.slane %v289_v23, %v346_v7  ;;  %v279_v28 = vpop.xlane.xlu0 %278 }
  0xd5   : > { %v342_v30 = vsel %vm341_vm4, %v340_v25, %v335_v24  ;;  %v290_v31 = vmul.f32 0.00390625, %v279_v28  ;;  %v282_v32 = vpop.xlane.xlu1 %281 }
  0xd6   : > { %v291_v33 = vmul.f32 0.00390625, %v282_v32  ;;  %v349_v35 = vsel %vm348_vm5, %v347_v27, %v342_v30 }
  0xd7   : > { %v354_v34 = vrot.slane %v290_v31, %v353_v26 }
  0xd8   : > { %v361_v36 = vrot.slane %v291_v33, %v360_v29 }
  0xd9   : > { %v356_v37 = vsel %vm355_vm6, %v354_v34, %v349_v35 }
  0xda   : > { %v363_v38 = vsel %vm362_vm7, %v361_v36, %v356_v37 }
  0xdb   : > { %720 = vmatmul.mubr.msk.f32.vlgmr.msra.gmra.mrb[0].mxu0 %vm364_vm8, %v363_v38 }
 0x1ae   : > { %v433_v44 = vpop.f32.mrb[0].mxu0 }
 0x1af   : > { %v434_v45 = vadd.f32 %v433_v44, %v300_v43  ;;  %v721_v46 = vpop.f32.mrb[1].mxu0 }
 0x1b1   : > { %v437_v47 = vmax.f32 %v434_v45, 0.0 }
 0x1b3   : > { %727 = vmatmul.mubr.msk.f32.vlgmr.msra.gmra.mrb[0].mxu1 %vm441_vm9, %v437_v47 }
 0x286   : > { %v511_v49 = vpop.f32.mrb[0].mxu1 }
 0x287   : > { %v512_v50 = vadd.f32 %v511_v49, %v440_v48  ;;  %v728_v51 = vpop.f32.mrb[1].mxu1 }
 0x289   : > { %v515_v52 = vadd.f32 3.0, %v512_v50 }
 0x28b   : > { %v516_v53 = vmax.f32 %v515_v52, 0.0 }
 0x28d   : > { %v517_v54 = vmin.f32 %v516_v53, 6.0 }
 0x28f   : > { %v518_v56 = vmul.f32 0.16666667, %v517_v54 }
 0x291   : > { %v522_v57 = vrot.slane %v518_v56, %v521_v55 }
 0x293   : > { %528 = vbcast.lane.b32.xlu1 %v522_v57, 264  ;;  %524 = vbcast.lane.b32.xlu0 %v522_v57, 256 }
 0x297   : > { %532 = vbcast.lane.b32.xlu1 %v522_v57, 272  ;;  %540 = vbcast.lane.b32.xlu0 %v522_v57, 288 }
 0x29b   : > { %536 = vbcast.lane.b32.xlu1 %v522_v57, 280  ;;  %548 = vbcast.lane.b32.xlu0 %v522_v57, 304 }
 0x29f   : > { %544 = vbcast.lane.b32.xlu1 %v522_v57, 296 }
 0x2a3   : > { %552 = vbcast.lane.b32.xlu1 %v522_v57, 312 }
 0x305   : > { %v529_v58 = vpop.permute.xlu1 %528  ;;  %v525_v59 = vpop.permute.xlu0 %524 }
 0x306   : > { %v556_v60 = vmul.f32 %v529_v58, %v1058_v5  ;;  %v557_v61 = vmul.f32 %v529_v58, %v1060_v6  ;;  %v554_v62 = vmul.f32 %v525_v59, %v1048_v0  ;;  %v555_v40 = vmul.f32 %v525_v59, %v1050_v1 }
 0x308   : > { %572 = vst [vmem:[%s1150_s13 + $0x10] sm:$0xff] %v556_v60  ;;  %573 = vst [vmem:[%s1150_s13 + $0x18] sm:$0xff] %v557_v61 }
 0x309   : > { %570 = vst [vmem:[%s1150_s13] sm:$0xff] %v554_v62  ;;  %571 = vst [vmem:[%s1150_s13 + $0x8] sm:$0xff] %v555_v40  ;;  %v533_v5 = vpop.permute.xlu1 %532  ;;  %v541_v0 = vpop.permute.xlu0 %540 }
 0x30a   : > { %v558_v1 = vmul.f32 %v533_v5, %v1052_v2  ;;  %v559_v6 = vmul.f32 %v533_v5, %v1056_v4  ;;  %v562_v63 = vmul.f32 %v541_v0, %v1072_v12  ;;  %v563_v3 = vmul.f32 %v541_v0, %v1074_v13 }
 0x30c   : > { %574 = vst [vmem:[%s1150_s13 + $0x20] sm:$0xff] %v558_v1  ;;  %575 = vst [vmem:[%s1150_s13 + $0x28] sm:$0xff] %v559_v6 }
 0x30d   : > { %578 = vst [vmem:[%s1150_s13 + $0x40] sm:$0xff] %v562_v63  ;;  %579 = vst [vmem:[%s1150_s13 + $0x48] sm:$0xff] %v563_v3  ;;  %v537_v7 = vpop.permute.xlu1 %536  ;;  %v549_v10 = vpop.permute.xlu0 %548 }
 0x30e   : > { %v560_v2 = vmul.f32 %v537_v7, %v1064_v8  ;;  %v561_v11 = vmul.f32 %v537_v7, %v1066_v9  ;;  %v566_v4 = vmul.f32 %v549_v10, %v1084_v18  ;;  %v567_v12 = vmul.f32 %v549_v10, %v1086_v19 }
 0x310   : > { %576 = vst [vmem:[%s1150_s13 + $0x30] sm:$0xff] %v560_v2  ;;  %577 = vst [vmem:[%s1150_s13 + $0x38] sm:$0xff] %v561_v11 }
 0x311   : > { %582 = vst [vmem:[%s1150_s13 + $0x60] sm:$0xff] %v566_v4  ;;  %583 = vst [vmem:[%s1150_s13 + $0x68] sm:$0xff] %v567_v12  ;;  %v545_v13 = vpop.permute.xlu1 %544 }
 0x312   : > { %v564_v16 = vmul.f32 %v545_v13, %v1076_v14  ;;  %v565_v17 = vmul.f32 %v545_v13, %v1078_v15 }
 0x314   : > { %580 = vst [vmem:[%s1150_s13 + $0x50] sm:$0xff] %v564_v16  ;;  %581 = vst [vmem:[%s1150_s13 + $0x58] sm:$0xff] %v565_v17 }
 0x315   : > { %v553_v8 = vpop.permute.xlu1 %552 }
 0x316   : > { %v568_v9 = vmul.f32 %v553_v8, %v1088_v20  ;;  %v569_v14 = vmul.f32 %v553_v8, %v1090_v21 }
 0x318   : > { %584 = vst [vmem:[%s1150_s13 + $0x70] sm:$0xff] %v568_v9  ;;  %585 = vst [vmem:[%s1150_s13 + $0x78] sm:$0xff] %v569_v14 }
 0x319   : > { %840 = shalt.err (!%p837_p2)
}
 0x31a   : > { %s841_s8 = scalar_lea.hbm %s1181_s29, 2048  ;;  %s845_s10 = scalar_lea.hbm %s1236_s5, 4096 }
 0x31b   : > { %p842_p4 = scmp.ne.s32.totalorder %s1181_s29, %s841_s8  ;;  %p846_p9 = scmp.lt.u32.totalorder %s1181_s29, %s1236_s5 }
 0x31c   : > { %p847_p1 = scmp.lt.u32.totalorder %s845_s10, %s841_s8  ;;  %p849_p6 = scmp.lt.u32.totalorder %s841_s8, %s1181_s29 }
 0x31d   : > { %p843_p5 = pnand %p842_p4, %p1243_p11 }
 0x31e   : > { %p848_p3 = por %p847_p1, %p846_p9 }
 0x31f   : > { %p844_p7 = pneg %p843_p5 }
 0x320   : > { %p850_p12 = por %p849_p6, %p848_p3 }
 0x322   : > { %p851_p13 = pnand %p850_p12, %p844_p7 }
 0x324   : > { %854 = shalt.err (!%p851_p13)
}
 0x325   : > { %s902_s25 = smov 256   ;;  %s903_s26 = smov 16  }
 0x326   : > { %746 = dma.vmem_to_hbm [thread:$0]  (%p1243_p11), %s1183_s17, 2048, %s1181_s29, %s587_s22, %s902_s25, %s902_s25, %s903_s26  }
 0x327 PF: > { %s615_s28 = sand.u32 1, %s881_s18   ;;  %p1244_p8 = scmp.ne.s32.totalorder %s1241_s6, 0 }
 0x328   : > { %p1245_p10 = scmp.ge.s32.totalorder %s893_s21, 2  ;;  %s616_s12 = scalar_lea.sflag [#allocation4], %s615_s28 }
 0x32a   : > { %p753_p0 = pnand %p1245_p10, %p1244_p8 }
 0x32c   : > { %876 = dma.done.wait (!%p753_p0), %s616_s12, 2048  }
 0x32d   : > { %878 = vsyncadd (!%p753_p0), %s616_s12, 4294965248  ;;  %p18_p2 = scmp.ge.s32.totalorder %s959_s24, 4   ;;  %s1246_s18 = smov %s885_s19 }
 0x32e   : > { %s1247_s19 = smov %s889_s20  ;;  %s1248_s20 = smov %s971_s27 }
 0x32f   : > { %s1249_s21 = smov %s959_s24  ;;  %20 = sbr.rel (!%p18_p2) target bundleno = 5 (0x5), region = 85 }
 0x336   :  { %621 = vsyncpa [#allocation3], 1 }
 0x337   :  { %623 = vsyncpa [#allocation3 + $0x1], 1 }
 0x338   :  { %624 = vsyncpa [#allocation4], 1 }
 0x339   :  { %626 = vsyncpa [#allocation4 + $0x1], 1 }

</bundles_post_ra>
